<compile_context>
chip_gen: v5e
topology: v5e:2x2
jax: 0.10.0
libtpu: 0.0.40
codegen_flags: <defaults>
</compile_context>

<pallas_src>
import jax
import jax.numpy as jnp
from jax.experimental import pallas as pl
from jax.experimental.pallas import tpu as pltpu


def _round_up(n, m):
    return ((n + m - 1) // m) * m


def _center_loss_kernel(x_ref, lab_ref, c_ref, out_ref):
    """One grid step handles `tile` batch rows.

    x_ref   : (tile, D) feature tile (VMEM, auto-pipelined)
    lab_ref : (tile, 1) int32 labels for this tile (VMEM)
    c_ref   : (C, D)    full centers table (VMEM-resident across all steps)
    out_ref : (1, tile) per-row clamped squared distance (lane-dense output)
    """
    x = x_ref[...].astype(jnp.float32)            # (tile, D)
    c = c_ref[...].astype(jnp.float32)            # (C, D)
    lab = lab_ref[...]                            # (tile, 1) int32

    tile = x.shape[0]
    num_classes = c.shape[0]

    # MXU gather: one_hot(labels) @ centers == centers[labels]; no DMA needed.
    onehot = (lab == jax.lax.broadcasted_iota(
        jnp.int32, (tile, num_classes), 1)).astype(jnp.float32)
    cy = jnp.dot(onehot, c, preferred_element_type=jnp.float32)   # (tile, D)

    d = x - cy
    dist = jnp.sum(d * d, axis=1)                 # (tile,)
    dist = jnp.clip(dist, 1e-12, 1e12)            # matches torch .clamp
    # Batch on the lane axis -> one dense 128-wide store per 128 rows.
    out_ref[...] = jnp.reshape(dist, (1, tile))


def center_loss(x, centers, labels, *, tile_b=256):
    """x: (B, D), centers: (C, D), labels: (B,) int -> scalar f32 loss."""
    B, D = x.shape
    C, D2 = centers.shape
    assert D == D2, "feat_dim mismatch between x and centers"

    # Pick the batch tile: single full-extent block for small B, otherwise a
    # multiple of 128 so the (1, tile) output blocks stay lane-dense.
    if B <= tile_b:
        tile = max(8, _round_up(B, 8))            # one grid step, block == array
    else:
        tile = _round_up(tile_b, 128)
    B_pad = _round_up(B, tile)

    x_pad = jnp.pad(x, ((0, B_pad - B), (0, 0)))
    lab_pad = jnp.pad(labels.astype(jnp.int32),
                      (0, B_pad - B)).reshape(B_pad, 1)
    # Note: an out-of-range label just yields an all-zero one-hot row (no OOB
    # access possible); labels are assumed valid as in the PyTorch module.

    grid = (B_pad // tile,)
    per_row = pl.pallas_call(
        _center_loss_kernel,
        out_shape=jax.ShapeDtypeStruct((1, B_pad), jnp.float32),
        grid_spec=pltpu.PrefetchScalarGridSpec(
            num_scalar_prefetch=0,
            grid=grid,
            in_specs=[
                pl.BlockSpec((tile, D), lambda i: (i, 0)),   # x tile (stream)
                pl.BlockSpec((tile, 1), lambda i: (i, 0)),   # labels tile
                pl.BlockSpec((C, D), lambda i: (0, 0)),      # centers, resident
            ],
            out_specs=pl.BlockSpec((1, tile), lambda i: (0, i)),
        ),
        compiler_params=pltpu.CompilerParams(
            dimension_semantics=("parallel",)),              # rows independent
    )(x_pad, lab_pad, centers)

    # Masked-out entries of the original (B, C) formulation each contribute
    # clamp(0, 1e-12, 1e12) = 1e-12 to the pre-division sum.
    masked_const = jnp.float32(B * (C - 1)) * jnp.float32(1e-12)
    return (jnp.sum(per_row[0, :B]) + masked_const) / jnp.float32(B)


def center_loss_ref(x, centers, labels):
    """Pure-JAX reference mirroring the PyTorch forward exactly."""
    B = x.shape[0]
    C = centers.shape[0]
    distmat = (jnp.sum(x * x, axis=1, keepdims=True)
               + jnp.sum(centers * centers, axis=1)[None, :]
               - 2.0 * x @ centers.T)
    mask = (labels[:, None] == jnp.arange(C)[None, :]).astype(jnp.float32)
    dist = jnp.clip(distmat * mask, 1e-12, 1e12)
    return jnp.sum(dist) / B


if __name__ == "__main__":
    key = jax.random.PRNGKey(0)

    # Config 1: lane/tile friendly small shapes -> multi-tile grid path.
    # Config 2: tiny ragged shapes            -> padding + single-step path.
    for (B, C, D, tb) in [(256, 16, 128, 128), (10, 7, 32, 256)]:
        kx, kc, kl, key = jax.random.split(key, 4)
        x = jax.random.normal(kx, (B, D), dtype=jnp.float32)
        centers = jax.random.normal(kc, (C, D), dtype=jnp.float32)
        labels = jax.random.randint(kl, (B,), 0, C, dtype=jnp.int32)

        loss = jax.block_until_ready(center_loss(x, centers, labels, tile_b=tb))
        ref = center_loss_ref(x, centers, labels)
        assert jnp.allclose(loss, ref, rtol=1e-4, atol=1e-5), (B, C, D, loss, ref)

    print("KERNEL_OK")
</pallas_src>

<mosaic_0001>
module attributes {stable_mosaic.version = 11 : i64} {
  func.func @_center_loss_kernel(%arg0: i32, %arg1: memref<128x128xf32, #tpu.memory_space<vmem>>, %arg2: memref<128x1xi32, #tpu.memory_space<vmem>>, %arg3: memref<16x128xf32, #tpu.memory_space<vmem>>, %arg4: memref<1x128xf32, #tpu.memory_space<vmem>>) attributes {dimension_semantics = [#tpu.dimension_semantics<parallel>], iteration_bounds = array<i64: 2>, scalar_prefetch = 0 : i64, scratch_operands = 0 : i64, tpu.core_type = #tpu.core_type<tc>, window_params = [{transform_indices = @transform_0, window_bounds = array<i64: 128, 128>}, {transform_indices = @transform_1, window_bounds = array<i64: 128, 1>}, {pipeline_mode = #tpu.pipeline_mode<synchronous>, transform_indices = @transform_2, window_bounds = array<i64: 16, 128>}, {transform_indices = @transform_3, window_bounds = array<i64: 1, 128>}]} {
    %c0 = arith.constant 0 : index
    %c0_0 = arith.constant 0 : index
    %0 = vector.load %arg1[%c0, %c0_0] : memref<128x128xf32, #tpu.memory_space<vmem>>, vector<128x128xf32>
    %c0_1 = arith.constant 0 : index
    %c0_2 = arith.constant 0 : index
    %1 = vector.load %arg3[%c0_1, %c0_2] : memref<16x128xf32, #tpu.memory_space<vmem>>, vector<16x128xf32>
    %c0_3 = arith.constant 0 : index
    %c0_4 = arith.constant 0 : index
    %2 = vector.load %arg2[%c0_3, %c0_4] : memref<128x1xi32, #tpu.memory_space<vmem>>, vector<128x1xi32>
    %3 = tpu.iota {dimensions = array<i32: 1>} : vector<128x16xi32>
    %4 = vector.broadcast %2 : vector<128x1xi32> to vector<128x16xi32>
    %5 = arith.cmpi eq, %4, %3 : vector<128x16xi32>
    %6 = arith.extui %5 : vector<128x16xi1> to vector<128x16xi32>
    %7 = arith.sitofp %6 : vector<128x16xi32> to vector<128x16xf32>
    %cst = arith.constant dense<0.000000e+00> : vector<128x128xf32>
    %8 = tpu.matmul %7, %1, %cst {dimension_numbers = #tpu.dot_dimension_numbers<[1], [0], [0], [1], [0, 0, 1, 1], [], []>} : vector<128x16xf32>, vector<16x128xf32>, vector<128x128xf32> -> vector<128x128xf32>
    %9 = arith.subf %0, %8 : vector<128x128xf32>
    %10 = arith.mulf %9, %9 : vector<128x128xf32>
    %cst_5 = arith.constant dense<0.000000e+00> : vector<128xf32>
    %11 = vector.multi_reduction <add>, %10, %cst_5 [1] : vector<128x128xf32> to vector<128xf32>
    %cst_6 = arith.constant 9.99999996E-13 : f32
    %cst_7 = arith.constant 9.99999995E+11 : f32
    %12 = vector.broadcast %cst_6 : f32 to vector<128xf32>
    %13 = arith.maximumf %12, %11 : vector<128xf32>
    %14 = vector.broadcast %cst_7 : f32 to vector<128xf32>
    %15 = arith.minimumf %14, %13 : vector<128xf32>
    %16 = vector.shape_cast %15 : vector<128xf32> to vector<1x128xf32>
    %c0_8 = arith.constant 0 : index
    %c0_9 = arith.constant 0 : index
    %17 = vector.load %arg4[%c0_8, %c0_9] : memref<1x128xf32, #tpu.memory_space<vmem>>, vector<1x128xf32>
    tpu.vector_store %arg4[%c0_8, %c0_9], %16 {strides = array<i32>} : memref<1x128xf32, #tpu.memory_space<vmem>>, vector<1x128xf32>,
    return
  }
  func.func @transform_0(%arg0: i32) -> (i32, i32) {
    %c0_i32 = arith.constant 0 : i32
    %c0_i32_0 = arith.constant 0 : i32
    return %arg0, %c0_i32 : i32, i32
  }
  func.func @transform_1(%arg0: i32) -> (i32, i32) {
    %c0_i32 = arith.constant 0 : i32
    %c0_i32_0 = arith.constant 0 : i32
    return %arg0, %c0_i32 : i32, i32
  }
  func.func @transform_2(%arg0: i32) -> (i32, i32) {
    %c0_i32 = arith.constant 0 : i32
    %c0_i32_0 = arith.constant 0 : i32
    %c0_i32_1 = arith.constant 0 : i32
    return %c0_i32, %c0_i32_0 : i32, i32
  }
  func.func @transform_3(%arg0: i32) -> (i32, i32) {
    %c0_i32 = arith.constant 0 : i32
    %c0_i32_0 = arith.constant 0 : i32
    return %c0_i32, %arg0 : i32, i32
  }
}

</mosaic_0001>

<bundles_post_ra>
// kernel: tpu_custom_call.1
= control target key start
LH: loop header
LB: loop body
LE: loop exit
PB: predicated region body
PF: predicated region fallthrough
CT: control target
= control target key end

     0   :  { %8 = vsyncpa [#allocation3], 0  ;;  %s1158_s0 = inlined_call_operand.vmem [shape: f32[256,128], index: 0, kind: input, shape index: {}]   ;;  %s1159_s1 = inlined_call_operand.vmem [shape: s32[256,1], index: 1, kind: input, shape index: {}]   ;;  %s1160_s2 = inlined_call_operand.hbm [shape: f32[16,128], index: 2, kind: input, shape index: {}]   ;;  %s1161_s3 = inlined_call_operand.hbm [shape: f32[1,256], index: 3, kind: output, shape index: {}]  }
   0x1   :  { %9 = vsyncpa [#allocation4], 0 }
   0x2   :  { %11 = vsyncpa [#allocation4 + $0x1], 0  ;;  %s952_s12 = smov 0   ;;  %s954_s13 = smov 0  }
   0x3   :  { %s956_s14 = smov 0   ;;  %s958_s15 = smov 0  }
   0x4 LB: > { %s973_s16 = sadd.s32 4294967295, %s925_s15   ;;  %s722_s17 = sadd.s32 4294967294, %s925_s15   ;;  %s925_s15 = sphi %s958_s15, %s1167_s15   ;;  %s921_s14 = sphi %s956_s14, %s1166_s14   ;;  %s917_s13 = sphi %s954_s13, %s1165_s13   ;;  %s913_s12 = sphi %s952_s12, %s1164_s12  }
   0x5   : > { %s977_s18 = sadd.s32 1, %s925_s15   ;;  %s97_s19 = sadd.s32 1, %s921_s14 }
   0x6   : > { %s94_s20 = ssub.s32 %s925_s15, %s977_s18  ;;  %p107_p0 = scmp.ne.s32.totalorder %s921_s14, %s917_s13 }
   0x7   : > { %p95_p1 = scmp.eq.s32.totalorder %s94_s20, 0  ;;  %p108_p2 = scmp.eq.s32.totalorder %s973_s16, 1 }
   0x8   : > { %p113_p3 = scmp.ne.s32.totalorder %s917_s13, %s913_s12  ;;  %p114_p4 = scmp.eq.s32.totalorder %s722_s17, 1 }
   0x9   : > { %s988_s21 = scalar_select %p95_p1, %s921_s14, %s97_s19  }
   0xa   : > { %p990_p5 = por %p108_p2, %p107_p0  ;;  %p994_p6 = por %p114_p4, %p113_p3 }
   0xb   : > { %p723_p7 = scmp.ge.s32.totalorder %s925_s15, 1  ;;  %p121_p8 = scmp.lt.s32.totalorder %s925_s15, 3 }
   0xc   : > { %p786_p9 = scmp.eq.s32.totalorder %s973_s16, 0  ;;  %s132_s26 = sshll.u32 %s1160_s2, 4  ;;  %s133_s26 = int_to_ptr.hbm [resolvable:$true] %s132_s26 }
   0xd   : > { %p122_p10 = pnand %p723_p7, %p121_p8  ;;  %s927_s27 = smov [#allocation2]  }
   0xe   : > { %s134_s28 = sshll.u32 %s927_s27, 4  ;;  %s928_s29 = smov 128   ;;  %s135_s28 = int_to_ptr.vmem [resolvable:$true] %s134_s28 }
   0xf   : > { %p778_p11 = pneg %p122_p10  ;;  %s929_s30 = smov 8  }
  0x10   : > { %168 = sbr.rel (%p122_p10) target bundleno = 458 (0x1ca), region = 32 }
  0x11   : > { %p779_p12 = pnand %p786_p9, %p778_p11 }
  0x13   : > { %781 = dma.hbm_to_vmem [thread:$0]  (!%p779_p12), %s133_s26, 256, %s135_s28, [#allocation3], %s928_s29, %s928_s29, %s929_s30  }
  0x15   : > { %904 = dma.done.wait (%p786_p9), [#allocation3], 256  }
  0x16   : > { %906 = vsyncadd (%p786_p9), [#allocation3], 4294967040  ;;  %s728_s4 = sshll.u32 %s973_s16, 4  ;;  %v930_v0 = vmov 0   ;;  %v226_v17 = vld [vmem:[#allocation2 + $0x8] sm:$0xff]  ;;  %v225_v18 = vld [vmem:[#allocation2] sm:$0xff]  ;;  %v243_v20 = vlaneseq  ;;  %s639_s24 = scalar_lea.hbm %s1161_s3, %s973_s16 }
  0x17   : > { %827 = vset.pattern.permute.xlu1 %v930_v0  ;;  %826 = vset.pattern.permute.xlu0 %v930_v0  ;;  %p198_p13 = scmp.lt.s32.totalorder %s728_s4, 31  ;;  %vm341_vm0 = vcmask 130048   ;;  %v931_v25 = vmov 0.0   ;;  %s195_s17 = sand.u32 1, %s917_s13  }
  0x18   : > { %828 = vset.pattern.permute.xlu2 %v930_v0  ;;  %404 = vmatpush.msra.mxu0 %v226_v17  ;;  %v1037_v21 = vand.u32 127, %v243_v20  ;;  %s196_s25 = scalar_lea.vmem [#allocation5], %s195_s17  ;;  %s643_s27 = sshll.u32 %s639_s24, 4  ;;  %s644_s27 = int_to_ptr.hbm [resolvable:$true] %s643_s27 }
  0x19   : > { %s1169_s4 = smov (!%p198_p13, %s728_s4), 31  ;;  %766 = vmatpush.msra.mxu1 %v226_v17  ;;  %767 = vmatpush.msra.mxu2 %v226_v17  ;;  %s641_s26 = sshll.u32 %s196_s25, 4  ;;  %s642_s26 = int_to_ptr.vmem [resolvable:$true] %s641_s26 }
  0x1a   : > { %s729_s5 = sshll.u32 %s1169_s4, 3  ;;  %768 = vmatpush.msra.mxu3 %v226_v17  ;;  %405 = vmatpush.msra.mxu0 %v225_v18  ;;  %s631_s16 = scalar_lea.sflag [#allocation4], %s195_s17 }
  0x1b   : > { %s1019_s8 = scalar_lea.vmem %s1159_s1, %s729_s5  ;;  %769 = vmatpush.msra.mxu1 %v225_v18  ;;  %770 = vmatpush.msra.mxu2 %v225_v18  ;;  %s1076_s11 = scalar_lea.vmem %s1158_s0, %s729_s5 }
  0x1c   : > { %v231_v1 = vld [vmem:[%s1019_s8 + $0x20] sm:$0xff]  ;;  %v228_v3 = vld [vmem:[%s1019_s8 + $0x8] sm:$0xff]  ;;  %v229_v9 = vld [vmem:[%s1019_s8 + $0x10] sm:$0xff]  ;;  %771 = vmatpush.msra.mxu3 %v225_v18  ;;  %s873_s28 = sshra.s32 %s644_s27, 4  ;;  %s879_s5 = scalar_lea.hbm %s1161_s3, 2  ;;  %s874_s28 = int_to_ptr.hbm [resolvable:$true] %s873_s28 }
  0x1d   : > { %v227_v2 = vld [vmem:[%s1019_s8] sm:$0xff]  ;;  %258 = vperm.xlu1 %827, %v231_v1   ;;  %249 = vperm.xlu2 %828, %v228_v3   ;;  %v236_v6 = vld [vmem:[%s1019_s8 + $0x48] sm:$0xff]  ;;  %v233_v10 = vld [vmem:[%s1019_s8 + $0x30] sm:$0xff]  ;;  %s875_s29 = scalar_lea.hbm %s874_s28, 1  ;;  %p880_p3 = scmp.lt.s32.totalorder %s874_s28, %s1161_s3 }
  0x1e   : > { %246 = vperm.xlu0 %826, %v227_v2   ;;  %v239_v4 = vld [vmem:[%s1019_s8 + $0x60] sm:$0xff]  ;;  %v240_v7 = vld [vmem:[%s1019_s8 + $0x68] sm:$0xff]  ;;  %v237_v11 = vld [vmem:[%s1019_s8 + $0x50] sm:$0xff]  ;;  %p876_p0 = scmp.ne.s32.totalorder %s874_s28, %s875_s29  ;;  %p881_p4 = scmp.lt.s32.totalorder %s879_s5, %s875_s29 }
  0x1f   : > { %v235_v5 = vld [vmem:[%s1019_s8 + $0x40] sm:$0xff]  ;;  %v232_v8 = vld [vmem:[%s1019_s8 + $0x28] sm:$0xff]  ;;  %v241_v12 = vld [vmem:[%s1019_s8 + $0x70] sm:$0xff] }
  0x20   : > { %v238_v13 = vld [vmem:[%s1019_s8 + $0x58] sm:$0xff]  ;;  %v209_v54 = vld [vmem:[%s1076_s11] sm:$0xff]  ;;  %v219_v17 = vld [vmem:[%s1076_s11 + $0x50] sm:$0xff]  ;;  %p877_p1 = pnand %p876_p0, %p990_p5  ;;  %p882_p7 = por %p881_p4, %p880_p3 }
  0x21   : > { %v230_v14 = vld [vmem:[%s1019_s8 + $0x18] sm:$0xff]  ;;  %v213_v57 = vld [vmem:[%s1076_s11 + $0x20] sm:$0xff] }
  0x22   : > { %v234_v15 = vld [vmem:[%s1019_s8 + $0x38] sm:$0xff]  ;;  %v217_v62 = vld [vmem:[%s1076_s11 + $0x40] sm:$0xff]  ;;  %p878_p2 = pneg %p877_p1 }
  0x23   : > { %v242_v16 = vld [vmem:[%s1019_s8 + $0x78] sm:$0xff] }
  0x24   : > { %p883_p8 = pnand %p882_p7, %p878_p2 }
  0x25   : > { %282 = vperm.xlu1 %827, %v239_v4   ;;  %273 = vperm.xlu2 %828, %v236_v6   ;;  %v210_v4 = vld [vmem:[%s1076_s11 + $0x8] sm:$0xff] }
  0x26   : > { %270 = vperm.xlu0 %826, %v235_v5   ;;  %v218_v6 = vld [vmem:[%s1076_s11 + $0x48] sm:$0xff] }
  0x2d   : > { %285 = vperm.xlu1 %827, %v240_v7   ;;  %252 = vperm.xlu2 %828, %v229_v9  }
  0x2e   : > { %261 = vperm.xlu0 %826, %v232_v8  }
  0x35   : > { %264 = vperm.xlu1 %827, %v233_v10   ;;  %288 = vperm.xlu2 %828, %v241_v12  }
  0x36   : > { %276 = vperm.xlu0 %826, %v237_v11  }
  0x3d   : > { %279 = vperm.xlu1 %827, %v238_v13   ;;  %267 = vperm.xlu2 %828, %v234_v15   ;;  %v214_v13 = vld [vmem:[%s1076_s11 + $0x28] sm:$0xff]  ;;  %v211_v15 = vld [vmem:[%s1076_s11 + $0x10] sm:$0xff] }
  0x3e   : > { %255 = vperm.xlu0 %826, %v230_v14  }
  0x46   : > { %291 = vperm.xlu0 %826, %v242_v16  }
  0x77   : > { %v250_v19 = vpop.permute.xlu2 %249 }
  0x78   : > { %vm294_vm3 = vcmp.eq.s32.totalorder %v250_v19, %v1037_v21 }
  0x79   : > { %v733_v29 = vsel %vm294_vm3, 1.0, %v931_v25  ;;  %vm578_vm3 = vcmask 261312  }
  0x7f   : > { %v274_v22 = vpop.permute.xlu2 %273 }
  0x80   : > { %vm302_vm7 = vcmp.eq.s32.totalorder %v274_v22, %v1037_v21 }
  0x81   : > { %v741_v40 = vsel %vm302_vm7, 1.0, %v931_v25  ;;  %vm594_vm7 = vcmask 523712  }
  0x87   : > { %v253_v28 = vpop.permute.xlu2 %252 }
  0x88   : > { %vm295_vm6 = vcmp.eq.s32.totalorder %v253_v28, %v1037_v21  ;;  %v215_v28 = vld [vmem:[%s1076_s11 + $0x30] sm:$0xff] }
  0x89   : > { %v734_v36 = vsel %vm295_vm6, 1.0, %v931_v25  ;;  %vm590_vm6 = vcmask 458112  }
  0x8f   : > { %v259_v23 = vpop.permute.xlu1 %258  ;;  %v289_v37 = vpop.permute.xlu2 %288 }
  0x90   : > { %v247_v24 = vpop.permute.xlu0 %246  ;;  %vm297_vm1 = vcmp.eq.s32.totalorder %v259_v23, %v1037_v21  ;;  %vm307_vm10 = vcmp.eq.s32.totalorder %v289_v37, %v1037_v21  ;;  %v220_v37 = vld [vmem:[%s1076_s11 + $0x58] sm:$0xff] }
  0x91   : > { %vm293_vm2 = vcmp.eq.s32.totalorder %v247_v24, %v1037_v21  ;;  %v736_v26 = vsel %vm297_vm1, 1.0, %v931_v25  ;;  %v746_v45 = vsel %vm307_vm10, 1.0, %v931_v25  ;;  %vm606_vm10 = vcmask 720512  }
  0x92   : > { %v732_v27 = vsel %vm293_vm2, 1.0, %v931_v25  ;;  %752 = vmatmul.msk.f32.vlgmr.msra.gmra.mxu1 %vm341_vm0, %v736_v26  ;;  %v212_v26 = vld [vmem:[%s1076_s11 + $0x18] sm:$0xff]  ;;  %vm574_vm2 = vcmask 195712  }
  0x93   : > { %748 = vmatmul.msk.f32.vlgmr.msra.gmra.mxu0 %vm341_vm0, %v732_v27 }
  0x97   : > { %v283_v30 = vpop.permute.xlu1 %282  ;;  %v268_v46 = vpop.permute.xlu2 %267 }
  0x98   : > { %v271_v31 = vpop.permute.xlu0 %270  ;;  %vm305_vm4 = vcmp.eq.s32.totalorder %v283_v30, %v1037_v21  ;;  %vm300_vm13 = vcmp.eq.s32.totalorder %v268_v46, %v1037_v21 }
  0x99   : > { %vm301_vm5 = vcmp.eq.s32.totalorder %v271_v31, %v1037_v21  ;;  %v744_v32 = vsel %vm305_vm4, 1.0, %v931_v25  ;;  %v739_v49 = vsel %vm300_vm13, 1.0, %v931_v25  ;;  %vm582_vm4 = vcmask 326912  }
  0x9a   : > { %v740_v33 = vsel %vm301_vm5, 1.0, %v931_v25  ;;  %760 = vmatmul.msk.f32.vlgmr.msra.gmra.mxu3 %vm341_vm0, %v744_v32  ;;  %vm586_vm5 = vcmask 392512   ;;  %vm618_vm13 = vcmask 917312  }
  0x9b   : > { %749 = vmatmul.msk.f32.gmra.mxu0 %vm341_vm0, %v733_v29  ;;  %756 = vmatmul.msk.f32.vlgmr.msra.gmra.mxu2 %vm341_vm0, %v740_v33  ;;  %v216_v29 = vld [vmem:[%s1076_s11 + $0x38] sm:$0xff] }
  0x9f   : > { %v286_v34 = vpop.permute.xlu1 %285 }
  0xa0   : > { %v262_v35 = vpop.permute.xlu0 %261  ;;  %vm306_vm8 = vcmp.eq.s32.totalorder %v286_v34, %v1037_v21 }
  0xa1   : > { %vm298_vm9 = vcmp.eq.s32.totalorder %v262_v35, %v1037_v21  ;;  %v745_v38 = vsel %vm306_vm8, 1.0, %v931_v25  ;;  %vm598_vm8 = vcmask 589312  }
  0xa2   : > { %v737_v39 = vsel %vm298_vm9, 1.0, %v931_v25  ;;  %761 = vmatmul.msk.f32.gmra.mxu3 %vm341_vm0, %v745_v38  ;;  %vm602_vm9 = vcmask 654912  }
  0xa3   : > { %750 = vmatmul.msk.f32.gmra.mxu0 %vm341_vm0, %v734_v36  ;;  %753 = vmatmul.msk.f32.gmra.mxu1 %vm341_vm0, %v737_v39  ;;  %v221_v39 = vld [vmem:[%s1076_s11 + $0x60] sm:$0xff] }
  0xa4   : > { %757 = vmatmul.msk.f32.gmra.mxu2 %vm341_vm0, %v741_v40  ;;  %v222_v40 = vld [vmem:[%s1076_s11 + $0x68] sm:$0xff] }
  0xa7   : > { %v265_v41 = vpop.permute.xlu1 %264 }
  0xa8   : > { %v277_v42 = vpop.permute.xlu0 %276  ;;  %vm299_vm11 = vcmp.eq.s32.totalorder %v265_v41, %v1037_v21 }
  0xa9   : > { %vm303_vm12 = vcmp.eq.s32.totalorder %v277_v42, %v1037_v21  ;;  %v738_v43 = vsel %vm299_vm11, 1.0, %v931_v25  ;;  %vm610_vm11 = vcmask 786112  }
  0xaa   : > { %v742_v44 = vsel %vm303_vm12, 1.0, %v931_v25  ;;  %762 = vmatmul.msk.f32.gmra.mxu3 %vm341_vm0, %v746_v45  ;;  %vm614_vm12 = vcmask 851712  }
  0xab   : > { %754 = vmatmul.msk.f32.gmra.mxu1 %vm341_vm0, %v738_v43 }
  0xac   : > { %758 = vmatmul.msk.f32.gmra.mxu2 %vm341_vm0, %v742_v44 }
  0xaf   : > { %v280_v47 = vpop.permute.xlu1 %279 }
  0xb0   : > { %v256_v48 = vpop.permute.xlu0 %255  ;;  %vm304_vm14 = vcmp.eq.s32.totalorder %v280_v47, %v1037_v21 }
  0xb1   : > { %vm296_vm15 = vcmp.eq.s32.totalorder %v256_v48, %v1037_v21  ;;  %v743_v50 = vsel %vm304_vm14, 1.0, %v931_v25  ;;  %v223_v48 = vld [vmem:[%s1076_s11 + $0x70] sm:$0xff]  ;;  %vm622_vm14 = vcmask 982912  }
  0xb2   : > { %v735_v51 = vsel %vm296_vm15, 1.0, %v931_v25  ;;  %vm626_vm15 = vcmask 1048512  }
  0xb3   : > { %751 = vmatmul.msk.f32.gmra.mxu0 %vm341_vm0, %v735_v51  ;;  %755 = vmatmul.msk.f32.gmra.mxu1 %vm341_vm0, %v739_v49  ;;  %v224_v49 = vld [vmem:[%s1076_s11 + $0x78] sm:$0xff] }
  0xb4   : > { %759 = vmatmul.msk.f32.gmra.mxu2 %vm341_vm0, %v743_v50 }
  0xb8   : > { %v292_v52 = vpop.permute.xlu0 %291 }
  0xb9   : > { %vm308_vm1 = vcmp.eq.s32.totalorder %v292_v52, %v1037_v21 }
  0xba   : > { %v747_v53 = vsel %vm308_vm1, 1.0, %v931_v25 }
  0xbb   : > { %763 = vmatmul.msk.f32.gmra.mxu3 %vm341_vm0, %v747_v53  ;;  %vm570_vm0 = vcmask 130112  }
 0x10f   : > { %v419_v58 = vpop.f32.mrf.mxu1 }
 0x110   : > { %v407_v55 = vpop.f32.mrf.mxu0  ;;  %v459_v60 = vsub.f32 %v213_v57, %v419_v58 }
 0x111   : > { %v455_v56 = vsub.f32 %v209_v54, %v407_v55 }
 0x112   : > { %v475_v61 = vmul.f32 %v459_v60, %v459_v60 }
 0x113   : > { %v471_v59 = vmul.f32 %v455_v56, %v455_v56 }
 0x115   : > { %487 = vadd.xlane.f32.xlu1 %v471_v59 }
 0x118   : > { %v410_v1 = vpop.f32.mrf.mxu0 }
 0x119   : > { %v456_v5 = vsub.f32 %v210_v4, %v410_v1  ;;  %v1096_v4 = vadd.s32 4294967232, %v1037_v21 }
 0x11b   : > { %v472_v10 = vmul.f32 %v456_v5, %v456_v5  ;;  %v568_v5 = vadd.s32 4294967288, %v1037_v21 }
 0x11d   : > { %495 = vadd.xlane.f32.xlu1 %v475_v61  ;;  %v443_v7 = vpop.f32.mrf.mxu3 }
 0x11e   : > { %v431_v63 = vpop.f32.mrf.mxu2  ;;  %v467_v43 = vsub.f32 %v221_v39, %v443_v7  ;;  %v1100_v7 = vadd.s32 4294967224, %v1037_v21 }
 0x11f   : > { %v463_v0 = vsub.f32 %v217_v62, %v431_v63 }
 0x120   : > { %v422_v2 = vpop.f32.mrf.mxu1  ;;  %v413_v12 = vpop.f32.mrf.mxu0  ;;  %v483_v46 = vmul.f32 %v467_v43, %v467_v43 }
 0x121   : > { %v479_v3 = vmul.f32 %v463_v0, %v463_v0  ;;  %v460_v16 = vsub.f32 %v214_v13, %v422_v2  ;;  %v457_v18 = vsub.f32 %v211_v15, %v413_v12  ;;  %v588_v15 = vadd.s32 4294967248, %v1037_v21 }
 0x123   : > { %503 = vadd.xlane.f32.xlu2 %v479_v3  ;;  %v476_v22 = vmul.f32 %v460_v16, %v460_v16  ;;  %v473_v24 = vmul.f32 %v457_v18, %v457_v18  ;;  %v580_v3 = vadd.s32 4294967264, %v1037_v21  ;;  %v576_v16 = vadd.s32 4294967272, %v1037_v21 }
 0x125   : > { %v446_v23 = vpop.f32.mrf.mxu3 }
 0x126   : > { %v468_v44 = vsub.f32 %v222_v40, %v446_v23 }
 0x127   : > { %v434_v8 = vpop.f32.mrf.mxu2 }
 0x128   : > { %v464_v9 = vsub.f32 %v218_v6, %v434_v8  ;;  %v425_v11 = vpop.f32.mrf.mxu1  ;;  %v484_v47 = vmul.f32 %v468_v44, %v468_v44  ;;  %v572_v8 = vadd.s32 4294967280, %v1037_v21 }
 0x129   : > { %v461_v32 = vsub.f32 %v215_v28, %v425_v11  ;;  %v584_v11 = vadd.s32 4294967256, %v1037_v21 }
 0x12a   : > { %v480_v14 = vmul.f32 %v464_v9, %v464_v9 }
 0x12b   : > { %489 = vadd.xlane.f32.xlu2 %v472_v10  ;;  %v477_v35 = vmul.f32 %v461_v32, %v461_v32 }
 0x12c   : > { %505 = vadd.xlane.f32.xlu0 %v480_v14  ;;  %v604_v14 = vadd.s32 4294967216, %v1037_v21 }
 0x12d   : > { %v449_v41 = vpop.f32.mrf.mxu3 }
 0x12e   : > { %v469_v51 = vsub.f32 %v223_v48, %v449_v41 }
 0x12f   : > { %v437_v19 = vpop.f32.mrf.mxu2 }
 0x130   : > { %v465_v20 = vsub.f32 %v219_v17, %v437_v19  ;;  %v416_v27 = vpop.f32.mrf.mxu0  ;;  %v428_v30 = vpop.f32.mrf.mxu1  ;;  %v485_v53 = vmul.f32 %v469_v51, %v469_v51  ;;  %v608_v51 = vadd.s32 4294967208, %v1037_v21 }
 0x131   : > { %v458_v31 = vsub.f32 %v212_v26, %v416_v27  ;;  %v462_v33 = vsub.f32 %v216_v29, %v428_v30 }
 0x132   : > { %v481_v25 = vmul.f32 %v465_v20, %v465_v20 }
 0x133   : > { %497 = vadd.xlane.f32.xlu2 %v476_v22  ;;  %v474_v34 = vmul.f32 %v458_v31, %v458_v31  ;;  %v478_v36 = vmul.f32 %v462_v33, %v462_v33  ;;  %v592_v22 = vadd.s32 4294967240, %v1037_v21 }
 0x134   : > { %491 = vadd.xlane.f32.xlu0 %v473_v24  ;;  %507 = vadd.xlane.f32.xlu1 %v481_v25 }
 0x137   : > { %v440_v38 = vpop.f32.mrf.mxu2 }
 0x138   : > { %v466_v42 = vsub.f32 %v220_v37, %v440_v38 }
 0x13a   : > { %v482_v45 = vmul.f32 %v466_v42, %v466_v42 }
 0x13b   : > { %493 = vadd.xlane.f32.xlu2 %v474_v34 }
 0x13c   : > { %499 = vadd.xlane.f32.xlu0 %v477_v35  ;;  %501 = vadd.xlane.f32.xlu1 %v478_v36 }
 0x13e   : > { %v452_v50 = vpop.f32.mrf.mxu3 }
 0x13f   : > { %v470_v52 = vsub.f32 %v224_v49, %v452_v50 }
 0x141   : > { %v486_v54 = vmul.f32 %v470_v52, %v470_v52 }
 0x143   : > { %509 = vadd.xlane.f32.xlu2 %v482_v45 }
 0x144   : > { %511 = vadd.xlane.f32.xlu0 %v483_v46  ;;  %513 = vadd.xlane.f32.xlu1 %v484_v47  ;;  %v612_v46 = vadd.s32 4294967200, %v1037_v21 }
 0x14b   : > { %515 = vadd.xlane.f32.xlu2 %v485_v53 }
 0x14c   : > { %517 = vadd.xlane.f32.xlu0 %v486_v54 }
 0x188   : > { %v488_v55 = vpop.xlane.xlu1 %487 }
 0x189   : > { %v519_v1 = vmax.f32 %v488_v55, 1e-12 }
 0x18b   : > { %v535_v10 = vmin.f32 %v519_v1, 1e+12 }
 0x18d   : > { %v567_v28 = vperm.slane %v535_v10, %v1037_v21 }
 0x190   : > { %v496_v58 = vpop.xlane.xlu1 %495 }
 0x191   : > { %v523_v2 = vmax.f32 %v496_v58, 1e-12 }
 0x193   : > { %v539_v13 = vmin.f32 %v523_v2, 1e+12 }
 0x195   : > { %v581_v32 = vperm.slane %v539_v13, %v580_v3 }
 0x196   : > { %v504_v56 = vpop.xlane.xlu2 %503 }
 0x197   : > { %v527_v24 = vmax.f32 %v504_v56, 1e-12 }
 0x199   : > { %v543_v38 = vmin.f32 %v527_v24, 1e+12 }
 0x19b   : > { %v597_v54 = vperm.slane %v543_v38, %v1096_v4 }
 0x19e   : > { %v490_v57 = vpop.xlane.xlu2 %489 }
 0x19f   : > { %v506_v59 = vpop.xlane.xlu0 %505  ;;  %v520_v61 = vmax.f32 %v490_v57, 1e-12 }
 0x1a0   : > { %v528_v29 = vmax.f32 %v506_v59, 1e-12 }
 0x1a1   : > { %v536_v6 = vmin.f32 %v520_v61, 1e+12 }
 0x1a2   : > { %v544_v40 = vmin.f32 %v528_v29, 1e+12 }
 0x1a3   : > { %v569_v18 = vperm.slane %v536_v6, %v568_v5  ;;  %v616_v5 = vadd.s32 4294967192, %v1037_v21 }
 0x1a4   : > { %v601_v57 = vperm.slane %v544_v40, %v1100_v7 }
 0x1a5   : > { %v571_v35 = vsel %vm570_vm0, %v569_v18, %v567_v28 }
 0x1a6   : > { %v498_v60 = vpop.xlane.xlu2 %497 }
 0x1a7   : > { %v492_v62 = vpop.xlane.xlu0 %491  ;;  %v508_v63 = vpop.xlane.xlu1 %507  ;;  %v524_v12 = vmax.f32 %v498_v60, 1e-12 }
 0x1a8   : > { %v521_v0 = vmax.f32 %v492_v62, 1e-12  ;;  %v529_v33 = vmax.f32 %v508_v63, 1e-12 }
 0x1a9   : > { %v540_v30 = vmin.f32 %v524_v12, 1e+12 }
 0x1aa   : > { %v537_v9 = vmin.f32 %v521_v0, 1e+12  ;;  %v545_v43 = vmin.f32 %v529_v33, 1e+12 }
 0x1ab   : > { %v585_v41 = vperm.slane %v540_v30, %v584_v11  ;;  %v624_v11 = vadd.s32 4294967176, %v1037_v21 }
 0x1ac   : > { %v573_v25 = vperm.slane %v537_v9, %v572_v8  ;;  %v605_v60 = vperm.slane %v545_v43, %v604_v14  ;;  %v620_v9 = vadd.s32 4294967184, %v1037_v21 }
 0x1ae   : > { %v494_v17 = vpop.xlane.xlu2 %493  ;;  %v575_v39 = vsel %vm574_vm2, %v573_v25, %v571_v35 }
 0x1af   : > { %v500_v19 = vpop.xlane.xlu0 %499  ;;  %v522_v20 = vmax.f32 %v494_v17, 1e-12  ;;  %v502_v23 = vpop.xlane.xlu1 %501 }
 0x1b0   : > { %v525_v26 = vmax.f32 %v500_v19, 1e-12  ;;  %v526_v27 = vmax.f32 %v502_v23, 1e-12 }
 0x1b1   : > { %v538_v31 = vmin.f32 %v522_v20, 1e+12 }
 0x1b2   : > { %v541_v34 = vmin.f32 %v525_v26, 1e+12  ;;  %v542_v37 = vmin.f32 %v526_v27, 1e+12 }
 0x1b3   : > { %v577_v36 = vperm.slane %v538_v31, %v576_v16 }
 0x1b4   : > { %v589_v44 = vperm.slane %v541_v34, %v588_v15  ;;  %v593_v49 = vperm.slane %v542_v37, %v592_v22 }
 0x1b5   : > { %v579_v42 = vsel %vm578_vm3, %v577_v36, %v575_v39 }
 0x1b6   : > { %v583_v45 = vsel %vm582_vm4, %v581_v32, %v579_v42  ;;  %v510_v47 = vpop.xlane.xlu2 %509 }
 0x1b7   : > { %v587_v48 = vsel %vm586_vm5, %v585_v41, %v583_v45  ;;  %v512_v50 = vpop.xlane.xlu0 %511  ;;  %v530_v52 = vmax.f32 %v510_v47, 1e-12  ;;  %v514_v53 = vpop.xlane.xlu1 %513 }
 0x1b8   : > { %v591_v55 = vsel %vm590_vm6, %v589_v44, %v587_v48  ;;  %v531_v56 = vmax.f32 %v512_v50, 1e-12  ;;  %v532_v63 = vmax.f32 %v514_v53, 1e-12 }
 0x1b9   : > { %v595_v58 = vsel %vm594_vm7, %v593_v49, %v591_v55  ;;  %v546_v59 = vmin.f32 %v530_v52, 1e+12 }
 0x1ba   : > { %v599_v61 = vsel %vm598_vm8, %v597_v54, %v595_v58  ;;  %v547_v62 = vmin.f32 %v531_v56, 1e+12  ;;  %v548_v6 = vmin.f32 %v532_v63, 1e+12 }
 0x1bb   : > { %v603_v0 = vsel %vm602_vm9, %v601_v57, %v599_v61  ;;  %v609_v1 = vperm.slane %v546_v59, %v608_v51 }
 0x1bc   : > { %v607_v2 = vsel %vm606_vm10, %v605_v60, %v603_v0  ;;  %v613_v3 = vperm.slane %v547_v62, %v612_v46  ;;  %v617_v15 = vperm.slane %v548_v6, %v616_v5 }
 0x1bd   : > { %v611_v4 = vsel %vm610_vm11, %v609_v1, %v607_v2 }
 0x1be   : > { %v516_v7 = vpop.xlane.xlu2 %515  ;;  %v615_v13 = vsel %vm614_vm12, %v613_v3, %v611_v4 }
 0x1bf   : > { %v518_v8 = vpop.xlane.xlu0 %517  ;;  %v533_v10 = vmax.f32 %v516_v7, 1e-12  ;;  %v619_v18 = vsel %vm618_vm13, %v617_v15, %v615_v13 }
 0x1c0   : > { %v534_v12 = vmax.f32 %v518_v8, 1e-12 }
 0x1c1   : > { %v549_v14 = vmin.f32 %v533_v10, 1e+12 }
 0x1c2   : > { %v550_v16 = vmin.f32 %v534_v12, 1e+12 }
 0x1c3   : > { %v621_v17 = vperm.slane %v549_v14, %v620_v9 }
 0x1c4   : > { %v625_v19 = vperm.slane %v550_v16, %v624_v11 }
 0x1c5   : > { %v623_v20 = vsel %vm622_vm14, %v621_v17, %v619_v18 }
 0x1c6   : > { %v627_v21 = vsel %vm626_vm15, %v625_v19, %v623_v20 }
 0x1c7   : > { %629 = vst [vmem:[%s196_s25] sm:$0x1] %v627_v21 }
 0x1c8   : > { %886 = shalt.err (!%p883_p8)
}
 0x1c9   : > { %776 = dma.vmem_to_hbm [thread:$0]  (%p990_p5), %s642_s26, 16, %s644_s27, %s631_s16  }
 0x1ca PF: > { %p788_p9 = scmp.ge.s32.totalorder %s925_s15, 2  ;;  %s655_s8 = sand.u32 1, %s913_s12  }
 0x1cb   : > { %s656_s9 = scalar_lea.sflag [#allocation4], %s655_s8 }
 0x1cc   : > { %p783_p10 = pnand %p788_p9, %p994_p6 }
 0x1ce   : > { %p784_p11 = pneg %p783_p10 }
 0x1d0   : > { %908 = dma.done.wait (%p784_p11), %s656_s9, 16  }
 0x1d1   : > { %910 = vsyncadd (%p784_p11), %s656_s9, 4294967280  ;;  %p14_p12 = scmp.ge.s32.totalorder %s977_s18, 4   ;;  %s1164_s12 = smov %s917_s13 }
 0x1d2   : > { %s1165_s13 = smov %s921_s14  ;;  %s1166_s14 = smov %s988_s21 }
 0x1d3   : > { %s1167_s15 = smov %s977_s18  ;;  %16 = sbr.rel (!%p14_p12) target bundleno = 4 (0x4), region = 75 }
 0x1d8   :  { %661 = vsyncpa [#allocation3], 1 }
 0x1d9   :  { %663 = vsyncpa [#allocation3 + $0x1], 1 }
 0x1da   :  { %664 = vsyncpa [#allocation4], 1 }
 0x1db   :  { %666 = vsyncpa [#allocation4 + $0x1], 1 }

</bundles_post_ra>
